<compile_context>
chip_gen: v7x
topology: tpu7x:2x2x1
jax: 0.10.0
libtpu: 0.0.40
codegen_flags: <defaults>
</compile_context>

<pallas_src>
import functools

import jax
import jax.numpy as jnp
from jax.experimental import pallas as pl
from jax.experimental.pallas import tpu as pltpu


def _round_up(x, m):
    return ((x + m - 1) // m) * m


def _vmem_capacity_bytes():
    try:
        return int(pltpu.get_tpu_info().vmem_capacity_bytes)
    except Exception:
        return 64 * 1024 * 1024  # conservative fallback: v7x per-TensorCore VMEM


def _choose_tile_b(B, F_pad, itemsize=4):
    """Largest row tile (multiple of 8) whose double-buffered footprint fits VMEM."""
    vmem = _vmem_capacity_bytes()
    budget = (vmem * 3) // 4                      # leave headroom for scratch/compiler
    cap = budget // (3 * 2 * F_pad * itemsize)    # 3 streams x 2 pipeline buffers
    cap = max(8, (cap // 8) * 8)
    cap = min(cap, 2048)                          # diminishing returns past ~2K rows
    b8 = _round_up(B, 8)
    if b8 > 8:
        # Keep at least 2 grid steps so v7x's two TensorCores both get work.
        cap = min(cap, max(8, _round_up(pl.cdiv(b8, 2), 8)))
    return min(cap, b8)


def _stacking_kernel(p_ref, x0_ref, x1_ref, o_ref, *, f_valid, f_padded):
    # p_ref: SMEM (2,) float32 scalars (the two learnable weights).
    p0 = p_ref[0]
    p1 = p_ref[1]

    # Weighted sum of the stacked inputs (elementwise, VPU).
    z = x0_ref[...] * p0 + x1_ref[...] * p1

    # If F was padded up to a lane multiple, mask the pad lanes out of the
    # softmax with -inf (exp -> 0, so they do not perturb the reduction).
    if f_valid != f_padded:
        lane = jax.lax.broadcasted_iota(jnp.int32, z.shape, dimension=1)
        z = jnp.where(lane < f_valid, z, -jnp.inf)

    # Numerically stable log_softmax over the last (lane) axis.
    m = jnp.max(z, axis=-1, keepdims=True)
    shifted = z - m
    lse = jnp.log(jnp.sum(jnp.exp(shifted), axis=-1, keepdims=True))
    o_ref[...] = (shifted - lse).astype(o_ref.dtype)


def stacking_net(params, x0, x1):
    """params: (2,) float32; x0, x1: (B, F) float32 -> log_softmax(x0*p0 + x1*p1, axis=-1)."""
    B, F = x0.shape
    assert x1.shape == (B, F)
    itemsize = jnp.dtype(jnp.float32).itemsize

    # Lane-dense output: pad F up to a multiple of 128 (masked in-kernel).
    F_pad = _round_up(F, 128)
    tile_b = _choose_tile_b(B, F_pad, itemsize)
    B_pad = _round_up(B, tile_b)

    if (B_pad, F_pad) != (B, F):
        pad = ((0, B_pad - B), (0, F_pad - F))
        x0 = jnp.pad(x0, pad)
        x1 = jnp.pad(x1, pad)

    # VMEM budget sized to the actual pipeline footprint (+ slack).
    footprint = 3 * 2 * tile_b * F_pad * itemsize
    vmem_limit = max(32 * 1024 * 1024, footprint + (4 << 20))
    vmem_limit = min(vmem_limit, (_vmem_capacity_bytes() * 9) // 10)

    kernel = functools.partial(_stacking_kernel, f_valid=F, f_padded=F_pad)

    out = pl.pallas_call(
        kernel,
        out_shape=jax.ShapeDtypeStruct((B_pad, F_pad), jnp.float32),
        grid_spec=pltpu.PrefetchScalarGridSpec(
            num_scalar_prefetch=0,
            grid=(B_pad // tile_b,),
            in_specs=[
                pl.BlockSpec(memory_space=pltpu.MemorySpace.SMEM),   # params (2,)
                pl.BlockSpec((tile_b, F_pad), lambda i: (i, 0)),
                pl.BlockSpec((tile_b, F_pad), lambda i: (i, 0)),
            ],
            out_specs=pl.BlockSpec((tile_b, F_pad), lambda i: (i, 0)),
        ),
        compiler_params=pltpu.CompilerParams(
            dimension_semantics=("parallel",),
            vmem_limit_bytes=int(vmem_limit),
        ),
    )(params, x0, x1)

    return out[:B, :F]


def stacking_net_ref(params, x0, x1):
    z = x0 * params[0] + x1 * params[1]
    return jax.nn.log_softmax(z, axis=-1)


if __name__ == "__main__":
    key = jax.random.PRNGKey(0)
    k_p, k_x0, k_x1 = jax.random.split(key, 3)

    # torch.rand(1) for each of the two params -> uniform [0, 1) scalars.
    params = jax.random.uniform(k_p, (2,), dtype=jnp.float32)

    # Aligned small case.
    B, F = 64, 128
    x0 = jax.random.normal(k_x0, (B, F), dtype=jnp.float32)
    x1 = jax.random.normal(k_x1, (B, F), dtype=jnp.float32)
    out = jax.block_until_ready(stacking_net(params, x0, x1))
    ref = stacking_net_ref(params, x0, x1)
    assert out.shape == ref.shape
    assert jnp.allclose(out, ref, atol=1e-5, rtol=1e-5), "mismatch (aligned case)"

    # Ragged case (exercises B/F padding + in-kernel lane masking).
    B2, F2 = 20, 100
    x0b = jax.random.normal(k_x0, (B2, F2), dtype=jnp.float32)
    x1b = jax.random.normal(k_x1, (B2, F2), dtype=jnp.float32)
    out2 = jax.block_until_ready(stacking_net(params, x0b, x1b))
    ref2 = stacking_net_ref(params, x0b, x1b)
    assert out2.shape == ref2.shape
    assert jnp.allclose(out2, ref2, atol=1e-5, rtol=1e-5), "mismatch (ragged case)"

    print("KERNEL_OK")
</pallas_src>

<mosaic_0001>
module attributes {stable_mosaic.version = 11 : i64} {
  func.func @_stacking_kernel(%arg0: i32, %arg1: memref<2xf32, #tpu.memory_space<smem>>, %arg2: memref<32x128xf32, #tpu.memory_space<vmem>>, %arg3: memref<32x128xf32, #tpu.memory_space<vmem>>, %arg4: memref<32x128xf32, #tpu.memory_space<vmem>>) attributes {dimension_semantics = [#tpu.dimension_semantics<parallel>], iteration_bounds = array<i64: 2>, scalar_prefetch = 0 : i64, scratch_operands = 0 : i64, tpu.core_type = #tpu.core_type<tc>, window_params = [{transform_indices = @transform_0, window_bounds = array<i64: 2>}, {transform_indices = @transform_1, window_bounds = array<i64: 32, 128>}, {transform_indices = @transform_2, window_bounds = array<i64: 32, 128>}, {transform_indices = @transform_3, window_bounds = array<i64: 32, 128>}]} {
    %c0 = arith.constant 0 : index
    %0 = memref.load %arg1[%c0] : memref<2xf32, #tpu.memory_space<smem>>
    %c1 = arith.constant 1 : index
    %1 = memref.load %arg1[%c1] : memref<2xf32, #tpu.memory_space<smem>>
    %c0_0 = arith.constant 0 : index
    %c0_1 = arith.constant 0 : index
    %2 = vector.load %arg2[%c0_0, %c0_1] : memref<32x128xf32, #tpu.memory_space<vmem>>, vector<32x128xf32>
    %3 = vector.broadcast %0 : f32 to vector<32x128xf32>
    %4 = arith.mulf %2, %3 : vector<32x128xf32>
    %c0_2 = arith.constant 0 : index
    %c0_3 = arith.constant 0 : index
    %5 = vector.load %arg3[%c0_2, %c0_3] : memref<32x128xf32, #tpu.memory_space<vmem>>, vector<32x128xf32>
    %6 = vector.broadcast %1 : f32 to vector<32x128xf32>
    %7 = arith.mulf %5, %6 : vector<32x128xf32>
    %8 = arith.addf %4, %7 : vector<32x128xf32>
    %cst = arith.constant dense<0xFF800000> : vector<32xf32>
    %9 = vector.multi_reduction <maximumf>, %8, %cst [1] : vector<32x128xf32> to vector<32xf32>
    %10 = vector.shape_cast %9 : vector<32xf32> to vector<32x1xf32>
    %11 = vector.broadcast %10 : vector<32x1xf32> to vector<32x128xf32>
    %12 = arith.subf %8, %11 : vector<32x128xf32>
    %13 = math.exp %12 : vector<32x128xf32>
    %cst_4 = arith.constant dense<0.000000e+00> : vector<32xf32>
    %14 = vector.multi_reduction <add>, %13, %cst_4 [1] : vector<32x128xf32> to vector<32xf32>
    %15 = vector.shape_cast %14 : vector<32xf32> to vector<32x1xf32>
    %16 = math.log %15 : vector<32x1xf32>
    %17 = vector.broadcast %16 : vector<32x1xf32> to vector<32x128xf32>
    %18 = arith.subf %12, %17 : vector<32x128xf32>
    %c0_5 = arith.constant 0 : index
    %c0_6 = arith.constant 0 : index
    %19 = vector.load %arg4[%c0_5, %c0_6] : memref<32x128xf32, #tpu.memory_space<vmem>>, vector<32x128xf32>
    tpu.vector_store %arg4[%c0_5, %c0_6], %18 {strides = array<i32>} : memref<32x128xf32, #tpu.memory_space<vmem>>, vector<32x128xf32>,
    return
  }
  func.func @transform_0(%arg0: i32) -> i32 {
    %c0_i32 = arith.constant 0 : i32
    %c0_i32_0 = arith.constant 0 : i32
    return %c0_i32 : i32
  }
  func.func @transform_1(%arg0: i32) -> (i32, i32) {
    %c0_i32 = arith.constant 0 : i32
    %c0_i32_0 = arith.constant 0 : i32
    return %arg0, %c0_i32 : i32, i32
  }
  func.func @transform_2(%arg0: i32) -> (i32, i32) {
    %c0_i32 = arith.constant 0 : i32
    %c0_i32_0 = arith.constant 0 : i32
    return %arg0, %c0_i32 : i32, i32
  }
  func.func @transform_3(%arg0: i32) -> (i32, i32) {
    %c0_i32 = arith.constant 0 : i32
    %c0_i32_0 = arith.constant 0 : i32
    return %arg0, %c0_i32 : i32, i32
  }
}

</mosaic_0001>

<bundles_post_ra>
// kernel: tpu_custom_call.1
= control target key start
LH: loop header
LB: loop body
LE: loop exit
PB: predicated region body
PF: predicated region fallthrough
CT: control target
= control target key end

     0   :  { %8 = vsyncpa [#allocation5], 0  ;;  %s967_s0 = inlined_call_operand.hbm [shape: f32[2], index: 0, kind: input, shape index: {}]   ;;  %s968_s1 = inlined_call_operand.hbm [shape: f32[64,128], index: 1, kind: input, shape index: {}]   ;;  %s969_s2 = inlined_call_operand.hbm [shape: f32[64,128], index: 2, kind: input, shape index: {}]   ;;  %s970_s3 = inlined_call_operand.hbm [shape: f32[64,128], index: 3, kind: output, shape index: {}]  }
   0x1   :  { %9 = vsyncpa [#allocation3], 0 }
   0x2   :  { %11 = vsyncpa [#allocation3 + $0x1], 0 }
   0x3   :  { %12 = vsyncpa [#allocation8], 0 }
   0x4   :  { %14 = vsyncpa [#allocation8 + $0x1], 0 }
   0x5   :  { %15 = vsyncpa [#allocation4], 0 }
   0x6   :  { %17 = vsyncpa [#allocation4 + $0x1], 0  ;;  %s717_s12 = smov 0   ;;  %s719_s13 = smov 0  }
   0x7   :  { %s721_s14 = smov 0   ;;  %s723_s15 = smov 0  }
   0x8 LB: > { %s738_s16 = sadd.s32 4294967295, %s687_s15   ;;  %s434_s17 = sadd.s32 4294967294, %s687_s15   ;;  %s687_s15 = sphi %s723_s15, %s990_s15   ;;  %s683_s14 = sphi %s721_s14, %s989_s14   ;;  %s679_s13 = sphi %s719_s13, %s988_s13   ;;  %s675_s12 = sphi %s717_s12, %s987_s12  }
   0x9   : > { %s742_s18 = sadd.s32 1, %s687_s15   ;;  %s51_s19 = sadd.s32 1, %s683_s14 }
   0xa   : > { %s48_s20 = ssub.s32 %s687_s15, %s742_s18  ;;  %p58_p0 = scmp.ne.s32.totalorder %s683_s14, %s679_s13 }
   0xb   : > { %p49_p1 = scmp.eq.s32.totalorder %s48_s20, 0  ;;  %p59_p2 = scmp.eq.s32.totalorder %s687_s15, 0 }
   0xc   : > { %p64_p3 = scmp.ne.s32.totalorder %s679_s13, %s675_s12  ;;  %p971_p4 = scmp.eq.s32.totalorder %s738_s16, 0 }
   0xd   : > { %s754_s21 = scalar_select %p49_p1, %s683_s14, %s51_s19  }
   0xe   : > { %p756_p5 = por %p59_p2, %p58_p0  ;;  %p762_p6 = por %p971_p4, %p64_p3 }
   0xf   : > { %p114_p7 = scmp.eq.s32.totalorder %s738_s16, 1  ;;  %p120_p8 = scmp.eq.s32.totalorder %s434_s17, 1 }
  0x10   : > { %s975_s23 = scalar_select %p762_p6, 1, 0 }
  0x11   : > { %p435_p9 = scmp.ge.s32.totalorder %s687_s15, 1  ;;  %p127_p10 = scmp.lt.s32.totalorder %s687_s15, 3 }
  0x12   : > { %p769_p11 = por %p114_p7, %p58_p0  ;;  %p773_p12 = por %p120_p8, %p64_p3 }
  0x13   : > { %p777_p13 = pnand %p435_p9, %p127_p10  ;;  %p484_p4 = scmp.lt.s32.totalorder %s687_s15, 2 }
  0x14   : > { %s976_s24 = scalar_select %p769_p11, 1, 0 }
  0x15   : > { %s977_s25 = scalar_select %p773_p12, 1, 0 }
  0x16   : > { %p468_p2 = pneg %p777_p13  ;;  %s786_s27 = sand.u32 1, %s683_s14  }
  0x17   : > { %s455_s28 = sshll.u32 %s687_s15, 9  ;;  %p979_p0 = scmp.eq.s32.totalorder %s738_s16, 0 }
  0x18   : > { %p793_p3 = pnand %p484_p4, %p756_p5  ;;  %s438_s30 = sshll.u32 %s786_s27, 5 }
  0x19   : > { %p469_p7 = pnand %p468_p2, %p979_p0  ;;  %s540_s6 = scalar_lea.hbm %s967_s0, 16 }
  0x1a   : > { %p541_p8 = scmp.ne.s32.totalorder %s967_s0, %s540_s6  ;;  %p547_p2 = scmp.lt.u32.totalorder %s540_s6, %s967_s0 }
  0x1b   : > { %p542_p9 = pneg %p469_p7 }
  0x1d   : > { %p543_p10 = pnand %p542_p9, %p541_p8 }
  0x1f   : > { %p544_p1 = pneg %p543_p10 }
  0x21   : > { %p549_p4 = pnand %p547_p2, %p544_p1 }
  0x23   : > { %552 = shalt.err (!%p549_p4)
}
  0x24   : > { %s689_s11 = smov [#allocation2]   ;;  %s815_s4 = scalar_lea.hbm %s968_s1, %s455_s28 }
  0x25   : > { %471 = dma.hbm_to_smem (!%p469_p7), %s967_s0, 16, %s689_s11, [#allocation5]  }
  0x26   : > { %s153_s5 = scalar_lea.vmem [#allocation6], %s438_s30  ;;  %s150_s7 = scalar_lea.sflag [#allocation3], %s786_s27 }
  0x27   : > { %s160_s6 = sshll.u32 %s153_s5, 4  ;;  %s553_s8 = scalar_lea.hbm %s815_s4, 512  ;;  %s819_s6 = int_to_ptr.vmem [resolvable:$true] %s160_s6 }
  0x28   : > { %p554_p5 = scmp.ne.s32.totalorder %s815_s4, %s553_s8  ;;  %p555_p1 = pneg %p793_p3 }
  0x29   : > { %s558_s11 = scalar_lea.hbm %s968_s1, 1024  ;;  %p559_p8 = scmp.lt.u32.totalorder %s815_s4, %s968_s1 }
  0x2a   : > { %p556_p0 = pnand %p555_p1, %p554_p5  ;;  %p560_p9 = scmp.lt.u32.totalorder %s558_s11, %s553_s8 }
  0x2b   : > { %p562_p2 = scmp.lt.u32.totalorder %s553_s8, %s815_s4 }
  0x2c   : > { %p557_p7 = pneg %p556_p0  ;;  %p561_p10 = por %p560_p9, %p559_p8 }
  0x2e   : > { %p563_p4 = por %p562_p2, %p561_p10 }
  0x30   : > { %p564_p12 = pnand %p563_p4, %p557_p7 }
  0x32   : > { %567 = shalt.err (!%p564_p12)
}
  0x33   : > { %s568_s20 = scalar_lea.vmem %s819_s6, 512  ;;  %s690_s22 = smov [#allocation6]  }
  0x34   : > { %p569_p5 = scmp.ne.s32.totalorder %s819_s6, %s568_s20  ;;  %s573_s5 = sshll.u32 %s690_s22, 4  ;;  %s574_s5 = int_to_ptr.vmem [resolvable:$false] %s573_s5 }
  0x35   : > { %s575_s9 = scalar_lea.vmem %s574_s5, 1024  ;;  %p576_p6 = scmp.lt.s32.totalorder %s819_s6, %s574_s5 }
  0x36   : > { %p571_p0 = pnand %p569_p5, %p555_p1  ;;  %p577_p8 = scmp.lt.s32.totalorder %s575_s9, %s568_s20 }
  0x38   : > { %p572_p11 = pneg %p571_p0  ;;  %p578_p9 = por %p577_p8, %p576_p6 }
  0x3a   : > { %p579_p10 = pnand %p578_p9, %p572_p11 }
  0x3c   : > { %582 = shalt.err (!%p579_p10)
}
  0x3d   : > { %s691_s8 = smov 128   ;;  %s692_s10 = smov 8  }
  0x3e   : > { %475 = dma.hbm_to_vmem [thread:$0]  (!%p793_p3), %s815_s4, 512, %s819_s6, %s150_s7, %s691_s8, %s691_s8, %s692_s10  }
  0x3f   : > { %s857_s19 = scalar_lea.hbm %s969_s2, %s455_s28  ;;  %s174_s20 = scalar_lea.vmem [#allocation7], %s438_s30 }
  0x40   : > { %s181_s22 = sshll.u32 %s174_s20, 4  ;;  %s171_s5 = scalar_lea.sflag [#allocation8], %s786_s27  ;;  %s861_s22 = int_to_ptr.vmem [resolvable:$true] %s181_s22 }
  0x41   : > { %s583_s9 = scalar_lea.hbm %s857_s19, 512  ;;  %s588_s28 = scalar_lea.hbm %s969_s2, 1024 }
  0x42   : > { %p584_p6 = scmp.ne.s32.totalorder %s857_s19, %s583_s9  ;;  %p589_p7 = scmp.lt.u32.totalorder %s857_s19, %s969_s2 }
  0x43   : > { %p590_p2 = scmp.lt.u32.totalorder %s588_s28, %s583_s9  ;;  %p592_p5 = scmp.lt.u32.totalorder %s583_s9, %s857_s19 }
  0x44   : > { %p586_p11 = pnand %p584_p6, %p555_p1 }
  0x45   : > { %p591_p4 = por %p590_p2, %p589_p7 }
  0x46   : > { %p587_p12 = pneg %p586_p11 }
  0x47   : > { %p593_p0 = por %p592_p5, %p591_p4 }
  0x49   : > { %p594_p8 = pnand %p593_p0, %p587_p12 }
  0x4b   : > { %597 = shalt.err (!%p594_p8)
}
  0x4c   : > { %s598_s30 = scalar_lea.vmem %s861_s22, 512  ;;  %s693_s17 = smov [#allocation7]  }
  0x4d   : > { %p599_p9 = scmp.ne.s32.totalorder %s861_s22, %s598_s30  ;;  %s603_s20 = sshll.u32 %s693_s17, 4  ;;  %s604_s20 = int_to_ptr.vmem [resolvable:$false] %s603_s20 }
  0x4e   : > { %s605_s4 = scalar_lea.vmem %s604_s20, 1024  ;;  %p606_p11 = scmp.lt.s32.totalorder %s861_s22, %s604_s20 }
  0x4f   : > { %p601_p10 = pnand %p599_p9, %p555_p1  ;;  %p607_p7 = scmp.lt.s32.totalorder %s605_s4, %s598_s30 }
  0x51   : > { %p602_p6 = pneg %p601_p10  ;;  %p608_p2 = por %p607_p7, %p606_p11 }
  0x53   : > { %p609_p4 = pnand %p608_p2, %p602_p6 }
  0x55   : > { %612 = shalt.err (!%p609_p4)
}
  0x56   : > { %478 = dma.hbm_to_vmem [thread:$0]  (!%p793_p3), %s857_s19, 512, %s861_s22, %s171_s5, %s691_s8, %s691_s8, %s692_s10  }
  0x57   : > { %193 = sbr.rel (%p777_p13) target bundleno = 451 (0x1c3), region = 32  ;;  %p981_p1 = scmp.eq.s32.totalorder (!%p777_p13), %s738_s16, 0 }
  0x5e   : > { %658 = dma.done.wait (%p981_p1), [#allocation5], 16   ;;  %p982_p12 = pmov %p981_p1 }
  0x5f   : > { %s899_s29 = sand.u32 1, %s679_s13   ;;  %p983_p3 = scmp.ne.s32.totalorder %s975_s23, 0 }
  0x60   : > { %660 = vsyncadd (%p982_p12), [#allocation5], 4294967280  ;;  %s902_s9 = sshll.u32 %s899_s29, 5  ;;  %s200_s27 = scalar_lea.sflag [#allocation3], %s899_s29 }
  0x61   : > { %s203_s8 = scalar_lea.vmem [#allocation6], %s902_s9 }
  0x62   : > { %662 = dma.done.wait (%p983_p3), %s200_s27, 512  }
  0x63   : > { %664 = vsyncadd (%p983_p3), %s200_s27, 4294966784  ;;  %s209_s26 = scalar_lea.sflag [#allocation8], %s899_s29  ;;  %s212_s10 = scalar_lea.vmem [#allocation7], %s902_s9 }
  0x64   : > { %666 = dma.done.wait (%p983_p3), %s209_s26, 512  }
  0x65   : > { %668 = vsyncadd (%p983_p3), %s209_s26, 4294966784 }
  0x66   : > { %217 = sfence }
  0x67   : > { %s244_s19 = sld [smem:[#allocation2]]  ;;  %s449_s22 = sld [smem:[#allocation2 + $0x1]]  ;;  %v246_v0 = vld [vmem:[%s203_s8] sm:$0xff]  ;;  %v248_v2 = vld [vmem:[%s203_s8 + $0x10] sm:$0xff]  ;;  %v247_v4 = vld [vmem:[%s203_s8 + $0x8] sm:$0xff] }
  0x68   : > { %v255_v1 = vld [vmem:[%s212_s10] sm:$0xff]  ;;  %v257_v3 = vld [vmem:[%s212_s10 + $0x10] sm:$0xff]  ;;  %v256_v5 = vld [vmem:[%s212_s10 + $0x8] sm:$0xff]  ;;  %s240_s23 = scalar_lea.vmem [#allocation9], %s902_s9  ;;  %s457_s6 = sshll.u32 %s738_s16, 9 }
  0x69   : > { %v249_v6 = vld [vmem:[%s203_s8 + $0x18] sm:$0xff]  ;;  %s326_s5 = sshll.u32 %s240_s23, 4  ;;  %s921_s11 = scalar_lea.hbm %s970_s3, %s457_s6  ;;  %s923_s5 = int_to_ptr.vmem [resolvable:$true] %s326_s5 }
  0x6a   : > { %v258_v7 = vld [vmem:[%s212_s10 + $0x18] sm:$0xff]  ;;  %s313_s30 = scalar_lea.sflag [#allocation4], %s899_s29  ;;  %s613_s17 = scalar_lea.vmem %s923_s5, 512 }
  0x6b   : > { %p614_p13 = scmp.ne.s32.totalorder %s923_s5, %s613_s17  ;;  %p984_p5 = scmp.ne.s32.totalorder %s976_s24, 0 }
  0x6c   : > { %s694_s16 = smov [#allocation9]  }
  0x6d   : > { %v250_v8 = vstv %s244_s19  ;;  %v259_v9 = vstv %s449_s22  ;;  %p615_p0 = pnand %p614_p13, %p984_p5  ;;  %s617_s20 = sshll.u32 %s694_s16, 4  ;;  %s618_s20 = int_to_ptr.vmem [resolvable:$false] %s617_s20 }
  0x6e   : > { %v251_v10 = vmul.f32 %v250_v8, %v246_v0  ;;  %v260_v11 = vmul.f32 %v259_v9, %v255_v1  ;;  %v253_v12 = vmul.f32 %v250_v8, %v248_v2  ;;  %v262_v13 = vmul.f32 %v259_v9, %v257_v3  ;;  %s619_s4 = scalar_lea.vmem %s618_s20, 1024  ;;  %p620_p9 = scmp.lt.s32.totalorder %s923_s5, %s618_s20 }
  0x6f   : > { %v252_v14 = vmul.f32 %v250_v8, %v247_v4  ;;  %v261_v15 = vmul.f32 %v259_v9, %v256_v5  ;;  %v254_v16 = vmul.f32 %v250_v8, %v249_v6  ;;  %v263_v17 = vmul.f32 %v259_v9, %v258_v7  ;;  %p616_p8 = pneg %p615_p0  ;;  %p621_p10 = scmp.lt.s32.totalorder %s619_s4, %s613_s17 }
  0x70   : > { %v264_v18 = vadd.f32 %v260_v11, %v251_v10  ;;  %v266_v19 = vadd.f32 %v262_v13, %v253_v12 }
  0x71   : > { %v265_v20 = vadd.f32 %v261_v15, %v252_v14  ;;  %v267_v21 = vadd.f32 %v263_v17, %v254_v16  ;;  %p622_p6 = por %p621_p10, %p620_p9 }
  0x72   : > { %268 = vmax.xlane.f32.xlu0 %v264_v18  ;;  %272 = vmax.xlane.f32.xlu1 %v266_v19 }
  0x73   : > { %p623_p11 = pnand %p622_p6, %p616_p8 }
  0x76   : > { %270 = vmax.xlane.f32.xlu0 %v265_v20  ;;  %274 = vmax.xlane.f32.xlu1 %v267_v21 }
  0xff   : > { %v269_v22 = vpop.xlane.xlu0 %268  ;;  %v273_v23 = vpop.xlane.xlu1 %272 }
 0x100   : > { %v276_v24 = vsub.f32 %v264_v18, %v269_v22  ;;  %v278_v25 = vsub.f32 %v266_v19, %v273_v23 }
 0x102   : > { %v280_v26 = vmul.f32 1.442695, %v276_v24  ;;  %v284_v27 = vmul.f32 1.442695, %v278_v25 }
 0x103   : > { %v271_v28 = vpop.xlane.xlu0 %270  ;;  %v275_v29 = vpop.xlane.xlu1 %274 }
 0x104   : > { %524 = vpow2.f32 %v280_v26  ;;  %v277_v30 = vsub.f32 %v265_v20, %v271_v28  ;;  %v279_v31 = vsub.f32 %v267_v21, %v275_v29 }
 0x105   : > { %526 = vpow2.f32 %v284_v27 }
 0x106   : > { %v282_v32 = vmul.f32 1.442695, %v277_v30  ;;  %v286_v33 = vmul.f32 1.442695, %v279_v31 }
 0x108   : > { %528 = vpow2.f32 %v282_v32 }
 0x109   : > { %530 = vpow2.f32 %v286_v33 }
 0x10e   : > { %v525_v34 = vpop.eup %524 }
 0x10f   : > { %288 = vadd.xlane.f32.xlu0 %v525_v34  ;;  %v527_v35 = vpop.eup %526 }
 0x112   : > { %v529_v36 = vpop.eup %528 }
 0x113   : > { %292 = vadd.xlane.f32.xlu0 %v527_v35  ;;  %290 = vadd.xlane.f32.xlu1 %v529_v36  ;;  %v531_v37 = vpop.eup %530 }
 0x117   : > { %294 = vadd.xlane.f32.xlu1 %v531_v37 }
 0x19c   : > { %v289_v38 = vpop.xlane.xlu0 %288 }
 0x19d   : > { %532 = vlog2.f32 %v289_v38 }
 0x1a0   : > { %v291_v39 = vpop.xlane.xlu1 %290  ;;  %v293_v40 = vpop.xlane.xlu0 %292 }
 0x1a1   : > { %534 = vlog2.f32 %v291_v39 }
 0x1a2   : > { %536 = vlog2.f32 %v293_v40 }
 0x1a4   : > { %v295_v41 = vpop.xlane.xlu1 %294 }
 0x1a5   : > { %538 = vlog2.f32 %v295_v41 }
 0x1a7   : > { %v533_v42 = vpop.eup %532 }
 0x1a8   : > { %v297_v43 = vmul.f32 0.6931472, %v533_v42 }
 0x1aa   : > { %v304_v44 = vsub.f32 %v276_v24, %v297_v43 }
 0x1ab   : > { %v535_v45 = vpop.eup %534 }
 0x1ac   : > { %v537_v46 = vpop.eup %536  ;;  %308 = vst [vmem:[%s240_s23] sm:$0xff] %v304_v44  ;;  %v299_v47 = vmul.f32 0.6931472, %v535_v45 }
 0x1ad   : > { %v301_v48 = vmul.f32 0.6931472, %v537_v46 }
 0x1ae   : > { %v305_v49 = vsub.f32 %v277_v30, %v299_v47 }
 0x1af   : > { %v539_v50 = vpop.eup %538  ;;  %v306_v51 = vsub.f32 %v278_v25, %v301_v48 }
 0x1b0   : > { %309 = vst [vmem:[%s240_s23 + $0x8] sm:$0xff] %v305_v49  ;;  %v303_v52 = vmul.f32 0.6931472, %v539_v50 }
 0x1b1   : > { %310 = vst [vmem:[%s240_s23 + $0x10] sm:$0xff] %v306_v51 }
 0x1b2   : > { %v307_v53 = vsub.f32 %v279_v31, %v303_v52 }
 0x1b4   : > { %311 = vst [vmem:[%s240_s23 + $0x18] sm:$0xff] %v307_v53 }
 0x1b5   : > { %626 = shalt.err (!%p623_p11)
}
 0x1b6   : > { %s627_s9 = scalar_lea.hbm %s921_s11, 512  ;;  %s631_s26 = scalar_lea.hbm %s970_s3, 1024 }
 0x1b7   : > { %p628_p7 = scmp.ne.s32.totalorder %s921_s11, %s627_s9  ;;  %p632_p1 = scmp.lt.u32.totalorder %s921_s11, %s970_s3 }
 0x1b8   : > { %p633_p12 = scmp.lt.u32.totalorder %s631_s26, %s627_s9  ;;  %p635_p13 = scmp.lt.u32.totalorder %s627_s9, %s921_s11 }
 0x1b9   : > { %p629_p2 = pnand %p628_p7, %p984_p5 }
 0x1ba   : > { %p634_p3 = por %p633_p12, %p632_p1 }
 0x1bb   : > { %p630_p4 = pneg %p629_p2 }
 0x1bc   : > { %p636_p0 = por %p635_p13, %p634_p3 }
 0x1be   : > { %p637_p8 = pnand %p636_p0, %p630_p4 }
 0x1c0   : > { %640 = shalt.err (!%p637_p8)
}
 0x1c1   : > { %s695_s22 = smov 128   ;;  %s696_s23 = smov 8  }
 0x1c2   : > { %466 = dma.vmem_to_hbm [thread:$0]  (%p984_p5), %s923_s5, 512, %s921_s11, %s313_s30, %s695_s22, %s695_s22, %s696_s23  }
 0x1c3 PF: > { %s341_s6 = sand.u32 1, %s675_s12   ;;  %p985_p9 = scmp.ne.s32.totalorder %s977_s25, 0 }
 0x1c4   : > { %p986_p10 = scmp.ge.s32.totalorder %s687_s15, 2  ;;  %s342_s28 = scalar_lea.sflag [#allocation4], %s341_s6 }
 0x1c6   : > { %p480_p6 = pnand %p986_p10, %p985_p9 }
 0x1c8   : > { %670 = dma.done.wait (!%p480_p6), %s342_s28, 512  }
 0x1c9   : > { %672 = vsyncadd (!%p480_p6), %s342_s28, 4294966784  ;;  %p20_p11 = scmp.ge.s32.totalorder %s742_s18, 4   ;;  %s987_s12 = smov %s679_s13 }
 0x1ca   : > { %s988_s13 = smov %s683_s14  ;;  %s989_s14 = smov %s754_s21 }
 0x1cb   : > { %s990_s15 = smov %s742_s18  ;;  %22 = sbr.rel (!%p20_p11) target bundleno = 8 (0x8), region = 95 }
 0x1d2   :  { %347 = vsyncpa [#allocation3], 1 }
 0x1d3   :  { %349 = vsyncpa [#allocation3 + $0x1], 1 }
 0x1d4   :  { %350 = vsyncpa [#allocation8], 1 }
 0x1d5   :  { %352 = vsyncpa [#allocation8 + $0x1], 1 }
 0x1d6   :  { %353 = vsyncpa [#allocation4], 1 }
 0x1d7   :  { %355 = vsyncpa [#allocation4 + $0x1], 1 }
 0x1d8   :  { %356 = vsyncpa [#allocation5], 1 }
 0x1d9   :  { %358 = vsyncpa [#allocation5 + $0x1], 1 }

</bundles_post_ra>
